<compile_context>
chip_gen: v7x
topology: tpu7x:2x2x1
jax: 0.10.0
libtpu: 0.0.40
codegen_flags: <defaults>
</compile_context>

<pallas_src>
from functools import partial

import jax
import jax.numpy as jnp
from jax.experimental import pallas as pl
from jax.experimental.pallas import tpu as pltpu


def beltrami_kernel(x_ref, w_ref, b_ref, o_ref, *, k):
    """Single block, no grid.  Batch is stacked on the sublane axis.

    x_ref: (B*C, N)   tokens, rows = (batch, channel) pairs, lanes = h*w
    w_ref: (B*C, B*C) block-diagonal kron(I_B, W[:C]) conv1x1 weight
    b_ref: (B*C, 1)   matching bias (tiled over batch)
    o_ref: (B*C, N)   output = first C channels of the Euler state, per batch
    """
    # --- conv1x1 == block-diagonal channel matmul on the MXU -> (B*C, N) ---
    fp = jnp.dot(w_ref[...], x_ref[...], preferred_element_type=jnp.float32)
    fp = fp + b_ref[...]                                    # lane-broadcast bias

    # --- GNNV2 (as written): empty pos slice -> sim == 0 -> attn = 1/k over the
    # first k tokens, so the GNN output is the per-row mean of the first k
    # tokens, broadcast over all tokens.  Computed as a full-width masked
    # row-sum (lane-dense; reduce goes to the XLU). ---
    bc, n = fp.shape
    lane_mask = jax.lax.broadcasted_iota(jnp.int32, (bc, n), 1) < k
    gnn = jnp.sum(jnp.where(lane_mask, fp, 0.0), axis=1, keepdims=True) * (1.0 / k)

    # --- odeint over t=[0,1], single explicit-Euler step: y1 = y0 + f(y0) ---
    o_ref[...] = (fp + gnn).astype(o_ref.dtype)


def beltrami_forward(x, conv_weight, conv_bias, k):
    """x: (b, c, h, w) NCHW f32; conv_weight: (2c, c, 1, 1); conv_bias: (2c,)."""
    b, c, h, w = x.shape
    n = h * w
    assert k <= n, "GNNV2 topk requires k <= h*w"

    # Natural NCHW flatten: rows are (batch, channel), lanes are tokens.
    x_tok = x.reshape(b * c, n)                         # (b*c, n), no transpose

    # Only the first c output channels survive BeltramiV2's final slice; the ODE
    # step is channelwise-decoupled, so compute just those channels.  Fold the
    # batch into a block-diagonal weight so a single matmul handles all rows.
    w_mat = conv_weight.reshape(2 * c, c)[:c]           # (c, c)
    w_blk = jnp.kron(jnp.eye(b, dtype=w_mat.dtype), w_mat)   # (b*c, b*c)
    bias = jnp.tile(conv_bias[:c], b).reshape(b * c, 1)      # (b*c, 1)

    bc = b * c
    flops = 2 * bc * bc * n + 4 * bc * n                # matmul + bias/mask/add
    bytes_accessed = 2 * bc * n * 4 + bc * bc * 4 + bc * 4

    out_tok = pl.pallas_call(
        partial(beltrami_kernel, k=k),
        out_shape=jax.ShapeDtypeStruct((bc, n), x.dtype),
        in_specs=[
            pl.BlockSpec((bc, n), lambda: (0, 0)),
            pl.BlockSpec((bc, bc), lambda: (0, 0)),
            pl.BlockSpec((bc, 1), lambda: (0, 0)),
        ],
        out_specs=pl.BlockSpec((bc, n), lambda: (0, 0)),
        cost_estimate=pl.CostEstimate(
            flops=flops, transcendentals=0, bytes_accessed=bytes_accessed),
    )(x_tok, w_blk, bias)

    return out_tok.reshape(b, c, h, w)                  # exact inverse of flatten


def beltrami_ref(x, conv_weight, conv_bias, k):
    """Pure-JAX reference mirroring the literal PyTorch forward."""
    b, c, h, w = x.shape
    wm = conv_weight.reshape(2 * c, c)
    fp = jnp.einsum("bchw,oc->bohw", x, wm) + conv_bias[None, :, None, None]
    tok = jnp.transpose(fp, (0, 2, 3, 1)).reshape(b, h * w, 2 * c)
    # pos slice empty -> sim == 0 -> uniform attention over first k tokens
    attn = jnp.full((b, h * w, k), 1.0 / k, x.dtype)
    topkfeat = tok[:, :k, :]
    gnn = jnp.einsum("bnk,bkc->bnc", attn, topkfeat)
    y = tok + gnn                      # one explicit-Euler step over [0, 1]
    y = y[:, :, :c]
    return jnp.transpose(y.reshape(b, h, w, c), (0, 3, 1, 2))


if __name__ == "__main__":
    dim, k = 4, 8                      # BeltramiV2(dim=4, k=8)
    b, h, w = 2, 16, 16

    key = jax.random.PRNGKey(0)
    kx, kw, kb = jax.random.split(key, 3)
    x = jax.random.normal(kx, (b, dim, h, w), jnp.float32)
    # deterministic synthetic parameters (Conv2d(dim, 2*dim, 1) shapes)
    conv_weight = 0.1 * jax.random.normal(kw, (2 * dim, dim, 1, 1), jnp.float32)
    conv_bias = 0.1 * jax.random.normal(kb, (2 * dim,), jnp.float32)

    out = beltrami_forward(x, conv_weight, conv_bias, k)
    out = jax.block_until_ready(out)

    ref = beltrami_ref(x, conv_weight, conv_bias, k)
    assert out.shape == (b, dim, h, w)
    assert jnp.allclose(out, ref, atol=1e-4, rtol=1e-4), "mismatch vs reference"

    print("KERNEL_OK")
</pallas_src>

<mosaic_0001>
module attributes {stable_mosaic.version = 11 : i64} {
  func.func @beltrami_kernel(%arg0: memref<8x256xf32, #tpu.memory_space<vmem>>, %arg1: memref<8x8xf32, #tpu.memory_space<vmem>>, %arg2: memref<8x1xf32, #tpu.memory_space<vmem>>, %arg3: memref<8x256xf32, #tpu.memory_space<vmem>>) attributes {dimension_semantics = [], scalar_prefetch = 0 : i64, scratch_operands = 0 : i64, tpu.core_type = #tpu.core_type<tc>} {
    %c0 = arith.constant 0 : index
    %c0_0 = arith.constant 0 : index
    %0 = vector.load %arg1[%c0, %c0_0] : memref<8x8xf32, #tpu.memory_space<vmem>>, vector<8x8xf32>
    %c0_1 = arith.constant 0 : index
    %c0_2 = arith.constant 0 : index
    %1 = vector.load %arg0[%c0_1, %c0_2] : memref<8x256xf32, #tpu.memory_space<vmem>>, vector<8x256xf32>
    %cst = arith.constant dense<0.000000e+00> : vector<8x256xf32>
    %2 = tpu.matmul %0, %1, %cst {dimension_numbers = #tpu.dot_dimension_numbers<[1], [0], [0], [1], [0, 0, 1, 1], [], []>} : vector<8x8xf32>, vector<8x256xf32>, vector<8x256xf32> -> vector<8x256xf32>
    %c0_3 = arith.constant 0 : index
    %c0_4 = arith.constant 0 : index
    %3 = vector.load %arg2[%c0_3, %c0_4] : memref<8x1xf32, #tpu.memory_space<vmem>>, vector<8x1xf32>
    %4 = vector.broadcast %3 : vector<8x1xf32> to vector<8x256xf32>
    %5 = arith.addf %2, %4 : vector<8x256xf32>
    %6 = tpu.iota {dimensions = array<i32: 1>} : vector<8x256xi32>
    %c8_i32 = arith.constant 8 : i32
    %7 = vector.broadcast %c8_i32 : i32 to vector<8x256xi32>
    %8 = arith.cmpi slt, %6, %7 : vector<8x256xi32>
    %cst_5 = arith.constant 0.000000e+00 : f32
    %9 = vector.broadcast %cst_5 : f32 to vector<8x256xf32>
    %10 = arith.select %8, %5, %9 : vector<8x256xi1>, vector<8x256xf32>
    %cst_6 = arith.constant dense<0.000000e+00> : vector<8xf32>
    %11 = vector.multi_reduction <add>, %10, %cst_6 [1] : vector<8x256xf32> to vector<8xf32>
    %12 = vector.shape_cast %11 : vector<8xf32> to vector<8x1xf32>
    %cst_7 = arith.constant 1.250000e-01 : f32
    %13 = vector.broadcast %cst_7 : f32 to vector<8x1xf32>
    %14 = arith.mulf %12, %13 : vector<8x1xf32>
    %15 = vector.broadcast %14 : vector<8x1xf32> to vector<8x256xf32>
    %16 = arith.addf %5, %15 : vector<8x256xf32>
    %c0_8 = arith.constant 0 : index
    %c0_9 = arith.constant 0 : index
    %17 = vector.load %arg3[%c0_8, %c0_9] : memref<8x256xf32, #tpu.memory_space<vmem>>, vector<8x256xf32>
    tpu.vector_store %arg3[%c0_8, %c0_9], %16 {strides = array<i32>} : memref<8x256xf32, #tpu.memory_space<vmem>>, vector<8x256xf32>,
    return
  }
}

</mosaic_0001>

<bundles_post_ra>
// kernel: tpu_custom_call.1
= control target key start
LH: loop header
LB: loop body
LE: loop exit
PB: predicated region body
PF: predicated region fallthrough
CT: control target
= control target key end

     0   :  { %8 = vsyncpa [#allocation3], 0  ;;  %s249_s0 = inlined_call_operand.hbm [shape: f32[8,256], index: 0, kind: input, shape index: {}]   ;;  %s250_s1 = inlined_call_operand.vmem [shape: f32[8,8], index: 1, kind: input, shape index: {}]   ;;  %s251_s2 = inlined_call_operand.vmem [shape: f32[8,1], index: 2, kind: input, shape index: {}]   ;;  %s252_s3 = inlined_call_operand.hbm [shape: f32[8,256], index: 3, kind: output, shape index: {}]  }
   0x1   :  { %9 = vsyncpa [#allocation4], 0  ;;  %s195_s12 = smov [#allocation2]   ;;  %s147_s16 = scalar_lea.hbm %s249_s0, 256 }
   0x2   :  { %s16_s13 = sshll.u32 %s195_s12, 4  ;;  %p148_p0 = scmp.ne.s32.totalorder %s249_s0, %s147_s16  ;;  %s17_s13 = int_to_ptr.vmem [resolvable:$true] %s16_s13 }
   0x3   :  { %p151_p1 = scmp.lt.u32.totalorder %s147_s16, %s249_s0 }
   0x5   :  { %p153_p2 = pnand %p151_p1, %p148_p0 }
   0x7   :  { %156 = shalt.err (!%p153_p2)
}
   0x8   :  { %s157_s21 = scalar_lea.vmem %s17_s13, 256  ;;  %p162_p4 = scmp.lt.s32.totalorder %s17_s13, %s17_s13 }
   0x9   :  { %p158_p3 = scmp.ne.s32.totalorder %s17_s13, %s157_s21  ;;  %p163_p5 = scmp.lt.s32.totalorder %s157_s21, %s157_s21 }
   0xb   :  { %p164_p6 = por %p163_p5, %p162_p4 }
   0xd   :  { %p165_p7 = pnand %p164_p6, %p158_p3 }
   0xf   :  { %168 = shalt.err (!%p165_p7)
}
  0x10   :  { %19 = dma.hbm_to_vmem [thread:$0]  %s249_s0, 256, %s17_s13, [#allocation3]  }
  0x11   :  { %191 = dma.done.wait [#allocation3], 256  }
  0x12   :  { %192 = vsyncadd [#allocation3], 4294967040  ;;  %v196_v0 = vmov 0.0   ;;  %v197_v1 = vmov 0   ;;  %v29_v2 = vld [vmem:[#allocation2 + $0x8] sm:$0xff]  ;;  %v28_v3 = vld [vmem:[#allocation2] sm:$0xff]  ;;  %v111_v6 = vlaneseq }
  0x13   :  { %104 = vmatprep.mubr.f32.mxu0 %v196_v0  ;;  %146 = vset.pattern.permute.xlu0 %v197_v1  ;;  %v27_v4 = vld [vmem:[%s250_s1] sm:$0xff]  ;;  %vm36_vm0 = vcmask 64512   ;;  %s198_s0 = smov [#allocation5]  }
  0x14   :  { %40 = vmatprep.subr.mxu0 %v29_v2  ;;  %v30_v5 = vld [vmem:[%s251_s2] sm:$0xff]  ;;  %v112_v7 = vand.u32 127, %v111_v6  ;;  %s132_s1 = sshll.u32 %s198_s0, 4  ;;  %s133_s1 = int_to_ptr.vmem [resolvable:$true] %s132_s1 }
  0x15   :  { %41 = vmatpush1.msra.mxu0 %v28_v3  ;;  %33 = vperm.xlu0 %146, %v30_v5   ;;  %s169_s2 = scalar_lea.vmem %s133_s1, 256  ;;  %p174_p9 = scmp.lt.s32.totalorder %s133_s1, %s133_s1 }
  0x16   :  { %141 = vmatmul.mubr.msk.f32.vlgmr.msra.gmra.mrb[0].mxu0 %vm36_vm0, %v27_v4  ;;  %vm114_vm1 = vcmp.lt.s32.totalorder %v112_v7, 8  ;;  %p170_p8 = scmp.ne.s32.totalorder %s133_s1, %s169_s2  ;;  %p175_p10 = scmp.lt.s32.totalorder %s169_s2, %s169_s2 }
  0x18   :  { %p176_p11 = por %p175_p10, %p174_p9 }
  0x1a   :  { %p177_p12 = pnand %p176_p11, %p170_p8 }
  0x94   :  { %v34_v8 = vpop.permute.xlu0 %33 }
  0xe9   :  { %v106_v9 = vpop.f32.mrb[0].mxu0 }
  0xea   :  { %v107_v10 = vadd.f32 %v106_v9, %v34_v8  ;;  %v108_v11 = vpop.f32.mrb[1].mxu0 }
  0xeb   :  { %v109_v14 = vadd.f32 %v108_v11, %v34_v8 }
  0xec   :  { %v116_v12 = vsel %vm114_vm1, %v107_v10, 0.0 }
  0xed   :  { %119 = vadd.xlane.f32.xlu0 %v116_v12 }
 0x17a   :  { %v120_v13 = vpop.xlane.xlu0 %119 }
 0x17b   :  { %v121_v15 = vmul.f32 0.125, %v120_v13 }
 0x17d   :  { %v122_v16 = vadd.f32 %v121_v15, %v107_v10  ;;  %v123_v17 = vadd.f32 %v121_v15, %v109_v14 }
 0x17f   :  { %124 = vst [vmem:[#allocation5] sm:$0xff] %v122_v16  ;;  %125 = vst [vmem:[#allocation5 + $0x8] sm:$0xff] %v123_v17 }
 0x180   :  { %180 = shalt.err (!%p177_p12)
}
 0x181   :  { %s181_s30 = scalar_lea.hbm %s252_s3, 256 }
 0x182   :  { %p182_p13 = scmp.ne.s32.totalorder %s252_s3, %s181_s30  ;;  %p185_p0 = scmp.lt.u32.totalorder %s181_s30, %s252_s3 }
 0x184   :  { %p187_p1 = pnand %p185_p0, %p182_p13 }
 0x186   :  { %190 = shalt.err (!%p187_p1)
}
 0x187   :  { %135 = dma.vmem_to_hbm [thread:$0]  %s133_s1, 256, %s252_s3, [#allocation4]  }
 0x188   :  { %193 = dma.done.wait [#allocation4], 256  }
 0x189   :  { %194 = vsyncadd [#allocation4], 4294967040 }
 0x18a   :  { %139 = vsyncpa [#allocation3], 1 }
 0x18b   :  { %140 = vsyncpa [#allocation4], 1 }

</bundles_post_ra>
